<compile_context>
chip_gen: v7x
topology: tpu7x:2x2x1
jax: 0.10.0
libtpu: 0.0.40
codegen_flags: <defaults>
</compile_context>

<pallas_src>
import functools

import jax
import jax.numpy as jnp
import numpy as np
from jax import lax
from jax.experimental import pallas as pl
from jax.experimental.pallas import tpu as pltpu


def _basic_block_kernel(xr_ref, w1_ref, w2_ref, pp_ref, out_ref, *, img_rows):
    # xr_ref : (M, 3*W*Cin)     bf16 row-im2col input, M = NB*H folded rows
    # w1_ref : (3*W*Cin, 2*W*P) bf16 banded [conv1 | downsample] weights
    # w2_ref : (W*P, 3*W*P)     bf16 banded conv2 weights, 3 kh taps concat'd
    # pp_ref : (8, W*P)         fp32 packed folded-BN vectors
    # out_ref: (M, W*P)         fp32
    M = xr_ref.shape[0]
    WP = out_ref.shape[1]
    H = img_rows

    # conv1 (3x3, pad 1) + downsample 1x1 conv fused into a single MXU matmul.
    y = jnp.dot(xr_ref[...], w1_ref[...],
                preferred_element_type=jnp.float32)            # (M, 2*WP)

    s1 = pp_ref[0:1, :]
    b1 = pp_ref[1:2, :]
    s2 = pp_ref[2:3, :]
    b2 = pp_ref[3:4, :]
    sd = pp_ref[4:5, :]
    bd = pp_ref[5:6, :]       # 1x1-conv bias folded into BN bias

    out1 = jnp.maximum(y[:, :WP] * s1 + b1, 0.0)               # bn1 + relu (fp32)
    ident = y[:, WP:] * sd + bd                                # downsample branch

    # conv2 (3x3, pad 1): kw is encoded in the banded weight; the three kh
    # taps are computed in ONE wide matmul and shifted on the result side with
    # non-negative sublane rolls + per-image boundary masks.
    t = jnp.dot(out1.astype(w2_ref.dtype), w2_ref[...],
                preferred_element_type=jnp.float32)            # (M, 3*WP)
    t0 = t[:, 0 * WP:1 * WP]   # tap kh=0: input row h -> output row h+1
    t1 = t[:, 1 * WP:2 * WP]   # tap kh=1: input row h -> output row h
    t2 = t[:, 2 * WP:3 * WP]   # tap kh=2: input row h -> output row h-1

    rmod = lax.broadcasted_iota(jnp.int32, (M, WP), 0) % H
    up = jnp.where(rmod == 0, 0.0, pltpu.roll(t0, shift=1, axis=0))
    dn = jnp.where(rmod == H - 1, 0.0, pltpu.roll(t2, shift=M - 1, axis=0))
    acc = up + t1 + dn

    out_ref[...] = jnp.maximum(acc * s2 + b2 + ident, 0.0)


def _band_from_tap(w_dy, W):
    """w_dy: (3, Ci, Co) conv taps for one kh -> block-banded (W*Ci, W*Co).

    band[w_in*Ci + ci, w_out*Co + co] = w_dy[w_in - w_out + 1, ci, co]
    (zero outside the 3-wide band) — encodes the kw shift and the W-boundary
    zero padding of a 3x3 / pad-1 convolution.
    """
    _, Ci, Co = w_dy.shape
    wi = np.arange(W)[:, None]
    wo = np.arange(W)[None, :]
    dx = wi - wo + 1                                           # (W, W)
    valid = jnp.asarray((dx >= 0) & (dx < 3), dtype=w_dy.dtype)
    blocks = w_dy[np.clip(dx, 0, 2)] * valid[:, :, None, None]  # (W, W, Ci, Co)
    return blocks.transpose(0, 2, 1, 3).reshape(W * Ci, W * Co)


def _diag_band(wd, W):
    """wd: (Ci, Co) 1x1-conv weight -> block-diagonal (W*Ci, W*Co)."""
    Ci, Co = wd.shape
    eye = jnp.eye(W, dtype=wd.dtype)[:, :, None, None]
    blocks = eye * wd[None, None, :, :]                        # (W, W, Ci, Co)
    return blocks.transpose(0, 2, 1, 3).reshape(W * Ci, W * Co)


def basic_block_forward(x_nchw, params):
    w1, w2, wd, bconv, s1, b1, s2, b2, sd, bd = params
    N, Cin, H, W = x_nchw.shape
    P = w1.shape[-1]
    WP = W * P
    K1 = 3 * W * Cin

    # Lane-dense layout assumption (conv2 operands / outputs are (., W*P)).
    assert WP % 128 == 0, "W*planes must be a multiple of 128"
    # TODO(synk): pad channels/width to a 128 multiple in the wrapper when the
    # assertion does not hold for a given shape.

    # Fold as many whole images as possible into the matmul M axis (target
    # >= 256 rows to fill the v6e/v7x MXU; >= 128 already fills v5e).
    nb = 1
    for cand in range(min(N, max(1, 256 // H)), 0, -1):
        if N % cand == 0:
            nb = cand
            break
    M = nb * H
    G = N // nb
    # NOTE(v7x): with 2 TensorCores, keeping G >= 2 "parallel" steps matters
    # once N is large; at the toy shape one fuller-M step wins (overhead-bound).

    # ---- wrapper-side layout prep (cheap one-time XLA ops) ----
    x = jnp.transpose(x_nchw, (0, 2, 3, 1)).astype(jnp.float32)      # NHWC
    xflat = x.reshape(N, H, W * Cin)
    xpadh = jnp.pad(xflat, ((0, 0), (1, 1), (0, 0)))                 # pad rows
    # row-im2col: xrows[n, h] = concat(x[n,h-1], x[n,h], x[n,h+1]) (0-padded).
    # TODO(synk): at large shapes pass the padded activation once and take
    # three pl.ds row windows in-kernel instead of this 3x-duplicated copy.
    xrows = jnp.concatenate(
        [xpadh[:, 0:H], xpadh[:, 1:H + 1], xpadh[:, 2:H + 2]], axis=-1)
    xrows = xrows.reshape(N * H, K1).astype(jnp.bfloat16)            # (N*H, K1)

    # Banded weights (bf16 MXU operands): conv1 | downsample fused; conv2 with
    # the 3 kh taps concatenated along the output dim.
    f32 = jnp.float32
    conv1_band = jnp.concatenate(
        [_band_from_tap(w1[dy].astype(f32), W) for dy in range(3)], axis=0)
    zeros_blk = jnp.zeros((W * Cin, WP), f32)
    ds_full = jnp.concatenate(
        [zeros_blk, _diag_band(wd.astype(f32), W), zeros_blk], axis=0)
    w1_full = jnp.concatenate([conv1_band, ds_full], axis=1).astype(jnp.bfloat16)
    w2_cat = jnp.concatenate(
        [_band_from_tap(w2[dy].astype(f32), W) for dy in range(3)],
        axis=1).astype(jnp.bfloat16)                                 # (WP, 3*WP)

    # Packed folded-BN vectors, tiled across W so they broadcast over (M, W*P).
    bd_fold = bconv * sd + bd            # fold the 1x1-conv bias into BN bias
    tile_w = lambda v: jnp.tile(v.astype(f32), W)
    pp = jnp.stack([tile_w(s1), tile_w(b1), tile_w(s2), tile_w(b2),
                    tile_w(sd), tile_w(bd_fold),
                    jnp.zeros((WP,), f32), jnp.zeros((WP,), f32)])   # (8, WP)

    # TODO(synk): the banded weights scale as (3*W*Cin)*(2*W*P) + (W*P)*(3*W*P);
    # W-tile (1-column halo) or K-tile with an fp32 accumulator before using
    # this beyond small W, and single-buffer the grid-invariant weight specs
    # (pipeline_mode=pl.Buffered(1)) once weight VMEM becomes significant.
    kernel = functools.partial(_basic_block_kernel, img_rows=H)
    out = pl.pallas_call(
        kernel,
        out_shape=jax.ShapeDtypeStruct((N * H, WP), jnp.float32),
        grid=(G,),
        in_specs=[
            pl.BlockSpec((M, K1), lambda g: (g, 0)),                 # xrows
            pl.BlockSpec((K1, 2 * WP), lambda g: (0, 0)),            # w1_full
            pl.BlockSpec((WP, 3 * WP), lambda g: (0, 0)),            # w2_cat
            pl.BlockSpec((8, WP), lambda g: (0, 0)),                 # packed BN
        ],
        out_specs=pl.BlockSpec((M, WP), lambda g: (g, 0)),           # lane-dense
        compiler_params=pltpu.CompilerParams(
            dimension_semantics=("parallel",),
            vmem_limit_bytes=32 * 1024 * 1024),
    )(xrows, w1_full, w2_cat, pp)

    return jnp.transpose(out.reshape(N, H, W, P), (0, 3, 1, 2))      # NCHW


def make_params(key, cin, planes):
    ks = jax.random.split(key, 8)
    w1 = 0.1 * jax.random.normal(ks[0], (3, 3, cin, planes), jnp.float32)
    w2 = 0.1 * jax.random.normal(ks[1], (3, 3, planes, planes), jnp.float32)
    wd = 0.1 * jax.random.normal(ks[2], (cin, planes), jnp.float32)
    bconv = 0.1 * jax.random.normal(ks[3], (planes,), jnp.float32)

    def bn_fold(k):
        k1, k2, k3, k4 = jax.random.split(k, 4)
        gamma = 1.0 + 0.1 * jax.random.normal(k1, (planes,), jnp.float32)
        beta = 0.1 * jax.random.normal(k2, (planes,), jnp.float32)
        mean = 0.1 * jax.random.normal(k3, (planes,), jnp.float32)
        var = 0.5 + jnp.abs(jax.random.normal(k4, (planes,), jnp.float32))
        scale = gamma * lax.rsqrt(var + 1e-5)
        bias = beta - mean * scale
        return scale, bias

    s1, b1 = bn_fold(ks[4])
    s2, b2 = bn_fold(ks[5])
    sd, bd = bn_fold(ks[6])
    return (w1, w2, wd, bconv, s1, b1, s2, b2, sd, bd)


def ref_forward(x_nchw, params):
    # Pure-JAX reference (lax convs) for the correctness check.
    w1, w2, wd, bconv, s1, b1, s2, b2, sd, bd = params
    x = jnp.transpose(x_nchw, (0, 2, 3, 1)).astype(jnp.float32)
    dn = ('NHWC', 'HWIO', 'NHWC')
    conv3 = lambda v, w: lax.conv_general_dilated(
        v, w, (1, 1), ((1, 1), (1, 1)), dimension_numbers=dn)
    out = conv3(x, w1) * s1 + b1
    out = jnp.maximum(out, 0.0)
    out = conv3(out, w2) * s2 + b2
    ident = lax.conv_general_dilated(
        x, wd.reshape(1, 1, *wd.shape), (1, 1), ((0, 0), (0, 0)),
        dimension_numbers=dn)
    ident = (ident + bconv) * sd + bd
    out = jnp.maximum(out + ident, 0.0)
    return jnp.transpose(out, (0, 3, 1, 2))


if __name__ == "__main__":
    key = jax.random.PRNGKey(0)
    kx, kp = jax.random.split(key)

    N, Cin, H, W, planes = 2, 4, 16, 16, 8        # inplanes=4, planes=8, stride=1
    x = jax.random.normal(kx, (N, Cin, H, W), jnp.float32)   # PyTorch-style NCHW
    params = make_params(kp, Cin, planes)

    y = jax.jit(basic_block_forward)(x, params)
    y = jax.block_until_ready(y)

    y_ref = ref_forward(x, params)
    # bf16 MXU operands (fp32 accumulate) -> slightly looser tolerance than fp32.
    np.testing.assert_allclose(np.asarray(y), np.asarray(y_ref),
                               atol=5e-2, rtol=5e-2)
    print("KERNEL_OK")
</pallas_src>

<mosaic_0001>
module attributes {stable_mosaic.version = 11 : i64} {
  func.func @_basic_block_kernel(%arg0: i32, %arg1: memref<32x192xbf16, #tpu.memory_space<vmem>>, %arg2: memref<192x256xbf16, #tpu.memory_space<vmem>>, %arg3: memref<128x384xbf16, #tpu.memory_space<vmem>>, %arg4: memref<8x128xf32, #tpu.memory_space<vmem>>, %arg5: memref<32x128xf32, #tpu.memory_space<vmem>>) attributes {dimension_semantics = [#tpu.dimension_semantics<parallel>], iteration_bounds = array<i64: 1>, scalar_prefetch = 0 : i64, scratch_operands = 0 : i64, tpu.core_type = #tpu.core_type<tc>, window_params = [{transform_indices = @transform_0, window_bounds = array<i64: 32, 192>}, {pipeline_mode = #tpu.pipeline_mode<synchronous>, transform_indices = @transform_1, window_bounds = array<i64: 192, 256>}, {pipeline_mode = #tpu.pipeline_mode<synchronous>, transform_indices = @transform_2, window_bounds = array<i64: 128, 384>}, {pipeline_mode = #tpu.pipeline_mode<synchronous>, transform_indices = @transform_3, window_bounds = array<i64: 8, 128>}, {transform_indices = @transform_4, window_bounds = array<i64: 32, 128>}]} {
    %c0 = arith.constant 0 : index
    %c0_0 = arith.constant 0 : index
    %0 = vector.load %arg1[%c0, %c0_0] : memref<32x192xbf16, #tpu.memory_space<vmem>>, vector<32x192xbf16>
    %c0_1 = arith.constant 0 : index
    %c0_2 = arith.constant 0 : index
    %1 = vector.load %arg2[%c0_1, %c0_2] : memref<192x256xbf16, #tpu.memory_space<vmem>>, vector<192x256xbf16>
    %cst = arith.constant dense<0.000000e+00> : vector<32x256xf32>
    %2 = tpu.matmul %0, %1, %cst {dimension_numbers = #tpu.dot_dimension_numbers<[1], [0], [0], [1], [0, 0, 1, 1], [], []>} : vector<32x192xbf16>, vector<192x256xbf16>, vector<32x256xf32> -> vector<32x256xf32>
    %c0_3 = arith.constant 0 : index
    %c0_4 = arith.constant 0 : index
    %3 = vector.load %arg4[%c0_3, %c0_4] : memref<8x128xf32, #tpu.memory_space<vmem>>, vector<1x128xf32>
    %c1 = arith.constant 1 : index
    %c0_5 = arith.constant 0 : index
    %4 = vector.load %arg4[%c1, %c0_5] : memref<8x128xf32, #tpu.memory_space<vmem>>, vector<1x128xf32>
    %c2 = arith.constant 2 : index
    %c0_6 = arith.constant 0 : index
    %5 = vector.load %arg4[%c2, %c0_6] : memref<8x128xf32, #tpu.memory_space<vmem>>, vector<1x128xf32>
    %c3 = arith.constant 3 : index
    %c0_7 = arith.constant 0 : index
    %6 = vector.load %arg4[%c3, %c0_7] : memref<8x128xf32, #tpu.memory_space<vmem>>, vector<1x128xf32>
    %c4 = arith.constant 4 : index
    %c0_8 = arith.constant 0 : index
    %7 = vector.load %arg4[%c4, %c0_8] : memref<8x128xf32, #tpu.memory_space<vmem>>, vector<1x128xf32>
    %c5 = arith.constant 5 : index
    %c0_9 = arith.constant 0 : index
    %8 = vector.load %arg4[%c5, %c0_9] : memref<8x128xf32, #tpu.memory_space<vmem>>, vector<1x128xf32>
    %9 = vector.extract_strided_slice %2 {offsets = [0, 0], sizes = [32, 128], strides = [1, 1]} : vector<32x256xf32> to vector<32x128xf32>
    %10 = vector.broadcast %3 : vector<1x128xf32> to vector<32x128xf32>
    %11 = arith.mulf %9, %10 : vector<32x128xf32>
    %12 = vector.broadcast %4 : vector<1x128xf32> to vector<32x128xf32>
    %13 = arith.addf %11, %12 : vector<32x128xf32>
    %cst_10 = arith.constant 0.000000e+00 : f32
    %14 = vector.broadcast %cst_10 : f32 to vector<32x128xf32>
    %15 = arith.maximumf %13, %14 : vector<32x128xf32>
    %16 = vector.extract_strided_slice %2 {offsets = [0, 128], sizes = [32, 128], strides = [1, 1]} : vector<32x256xf32> to vector<32x128xf32>
    %17 = vector.broadcast %7 : vector<1x128xf32> to vector<32x128xf32>
    %18 = arith.mulf %16, %17 : vector<32x128xf32>
    %19 = vector.broadcast %8 : vector<1x128xf32> to vector<32x128xf32>
    %20 = arith.addf %18, %19 : vector<32x128xf32>
    %21 = arith.truncf %15 : vector<32x128xf32> to vector<32x128xbf16>
    %c0_11 = arith.constant 0 : index
    %c0_12 = arith.constant 0 : index
    %22 = vector.load %arg3[%c0_11, %c0_12] : memref<128x384xbf16, #tpu.memory_space<vmem>>, vector<128x384xbf16>
    %cst_13 = arith.constant dense<0.000000e+00> : vector<32x384xf32>
    %23 = tpu.matmul %21, %22, %cst_13 {dimension_numbers = #tpu.dot_dimension_numbers<[1], [0], [0], [1], [0, 0, 1, 1], [], []>} : vector<32x128xbf16>, vector<128x384xbf16>, vector<32x384xf32> -> vector<32x384xf32>
    %24 = vector.extract_strided_slice %23 {offsets = [0, 0], sizes = [32, 128], strides = [1, 1]} : vector<32x384xf32> to vector<32x128xf32>
    %25 = vector.extract_strided_slice %23 {offsets = [0, 128], sizes = [32, 128], strides = [1, 1]} : vector<32x384xf32> to vector<32x128xf32>
    %26 = vector.extract_strided_slice %23 {offsets = [0, 256], sizes = [32, 128], strides = [1, 1]} : vector<32x384xf32> to vector<32x128xf32>
    %27 = tpu.iota {dimensions = array<i32: 0>} : vector<32x128xi32>
    %c16_i32 = arith.constant 16 : i32
    %c0_i32 = arith.constant 0 : i32
    %28 = arith.cmpi eq, %c16_i32, %c0_i32 : i32
    %c1_i32 = arith.constant 1 : i32
    %29 = arith.select %28, %c1_i32, %c16_i32 : i32
    %30 = vector.broadcast %29 : i32 to vector<32x128xi32>
    %31 = arith.remsi %27, %30 : vector<32x128xi32>
    %c0_i32_14 = arith.constant 0 : i32
    %32 = vector.broadcast %c0_i32_14 : i32 to vector<32x128xi32>
    %33 = arith.cmpi ne, %31, %32 : vector<32x128xi32>
    %c0_i32_15 = arith.constant 0 : i32
    %34 = vector.broadcast %c0_i32_15 : i32 to vector<32x128xi32>
    %35 = arith.cmpi slt, %31, %34 : vector<32x128xi32>
    %c0_i32_16 = arith.constant 0 : i32
    %36 = arith.cmpi slt, %29, %c0_i32_16 : i32
    %37 = vector.broadcast %36 : i1 to vector<32x128xi1>
    %38 = vector.broadcast %37 : vector<32x128xi1> to vector<32x128xi1>
    %39 = arith.xori %35, %38 : vector<32x128xi1>
    %40 = arith.andi %39, %33 : vector<32x128xi1>
    %41 = vector.broadcast %29 : i32 to vector<32x128xi32>
    %42 = arith.addi %31, %41 : vector<32x128xi32>
    %43 = arith.select %40, %42, %31 : vector<32x128xi1>, vector<32x128xi32>
    %c0_i32_17 = arith.constant 0 : i32
    %44 = vector.broadcast %c0_i32_17 : i32 to vector<32x128xi32>
    %45 = arith.cmpi eq, %43, %44 : vector<32x128xi32>
    %c1_i32_18 = arith.constant 1 : i32
    %46 = tpu.dynamic_rotate %24 by %c1_i32_18 dim 0 : vector<32x128xf32>, i32 -> vector<32x128xf32>
    %cst_19 = arith.constant 0.000000e+00 : f32
    %47 = vector.broadcast %cst_19 : f32 to vector<32x128xf32>
    %48 = arith.select %45, %47, %46 : vector<32x128xi1>, vector<32x128xf32>
    %c15_i32 = arith.constant 15 : i32
    %49 = vector.broadcast %c15_i32 : i32 to vector<32x128xi32>
    %50 = arith.cmpi eq, %43, %49 : vector<32x128xi32>
    %c31_i32 = arith.constant 31 : i32
    %51 = tpu.dynamic_rotate %26 by %c31_i32 dim 0 : vector<32x128xf32>, i32 -> vector<32x128xf32>
    %cst_20 = arith.constant 0.000000e+00 : f32
    %52 = vector.broadcast %cst_20 : f32 to vector<32x128xf32>
    %53 = arith.select %50, %52, %51 : vector<32x128xi1>, vector<32x128xf32>
    %54 = arith.addf %48, %25 : vector<32x128xf32>
    %55 = arith.addf %54, %53 : vector<32x128xf32>
    %56 = vector.broadcast %5 : vector<1x128xf32> to vector<32x128xf32>
    %57 = arith.mulf %55, %56 : vector<32x128xf32>
    %58 = vector.broadcast %6 : vector<1x128xf32> to vector<32x128xf32>
    %59 = arith.addf %57, %58 : vector<32x128xf32>
    %60 = arith.addf %59, %20 : vector<32x128xf32>
    %cst_21 = arith.constant 0.000000e+00 : f32
    %61 = vector.broadcast %cst_21 : f32 to vector<32x128xf32>
    %62 = arith.maximumf %60, %61 : vector<32x128xf32>
    %c0_22 = arith.constant 0 : index
    %c0_23 = arith.constant 0 : index
    %63 = vector.load %arg5[%c0_22, %c0_23] : memref<32x128xf32, #tpu.memory_space<vmem>>, vector<32x128xf32>
    tpu.vector_store %arg5[%c0_22, %c0_23], %62 {strides = array<i32>} : memref<32x128xf32, #tpu.memory_space<vmem>>, vector<32x128xf32>,
    return
  }
  func.func @transform_0(%arg0: i32) -> (i32, i32) {
    %c0_i32 = arith.constant 0 : i32
    %c0_i32_0 = arith.constant 0 : i32
    return %arg0, %c0_i32 : i32, i32
  }
  func.func @transform_1(%arg0: i32) -> (i32, i32) {
    %c0_i32 = arith.constant 0 : i32
    %c0_i32_0 = arith.constant 0 : i32
    %c0_i32_1 = arith.constant 0 : i32
    return %c0_i32, %c0_i32_0 : i32, i32
  }
  func.func @transform_2(%arg0: i32) -> (i32, i32) {
    %c0_i32 = arith.constant 0 : i32
    %c0_i32_0 = arith.constant 0 : i32
    %c0_i32_1 = arith.constant 0 : i32
    return %c0_i32, %c0_i32_0 : i32, i32
  }
  func.func @transform_3(%arg0: i32) -> (i32, i32) {
    %c0_i32 = arith.constant 0 : i32
    %c0_i32_0 = arith.constant 0 : i32
    %c0_i32_1 = arith.constant 0 : i32
    return %c0_i32, %c0_i32_0 : i32, i32
  }
  func.func @transform_4(%arg0: i32) -> (i32, i32) {
    %c0_i32 = arith.constant 0 : i32
    %c0_i32_0 = arith.constant 0 : i32
    return %arg0, %c0_i32 : i32, i32
  }
}

</mosaic_0001>

<bundles_post_ra>
// kernel: tile.53
= control target key start
LH: loop header
LB: loop body
LE: loop exit
PB: predicated region body
PF: predicated region fallthrough
CT: control target
= control target key end

     0   :  { %s28_s0 = inlined_call_operand.vmem [shape: f32[8], index: 0, kind: input, shape index: {}]   ;;  %s29_s1 = inlined_call_operand.vmem [shape: f32[16,8], index: 1, kind: output, shape index: {}]  }
   0x1   :  { %v4_v0 = vld [vmem:[%s28_s0] ss:$0 sm:$0xff] }
   0x2   :  { %5 = vst [vmem:[%s29_s1] sm:$0xff] %v4_v0  ;;  %8 = vst [vmem:[%s29_s1 + $0x8] sm:$0xff] %v4_v0 }

// kernel: tile.59
= control target key start
LH: loop header
LB: loop body
LE: loop exit
PB: predicated region body
PF: predicated region fallthrough
CT: control target
= control target key end

     0   :  { %s131_s10 = smov 120   ;;  %s132_s11 = smov 104   ;;  %vm3_vm0 = vcmask 64512   ;;  %vm9_vm1 = vcmask 1048512   ;;  %vm15_vm2 = vcmask 982912   ;;  %vm21_vm3 = vcmask 917312   ;;  %s207_s0 = inlined_call_operand.vmem [shape: f32[16,8], index: 0, kind: input, shape index: {}]   ;;  %s208_s1 = inlined_call_operand.vmem [shape: f32[1,128], index: 1, kind: output, shape index: {}]  }
   0x1   :  { %v101_v0 = vld [vmem:[%s207_s0 + $0xf] sm:$0x1]   ;;  %v103_v1 = vld [vmem:[%s207_s0 + $0xd] sm:$0x1]   ;;  %v102_v2 = vld [vmem:[%s207_s0 + $0xe] sm:$0x1]  }
   0x2   :  { %7 = vrot.lane.b32.xlu0 %v101_v0, %s131_s10  ;;  %19 = vrot.lane.b32.xlu1 %v103_v1, %s132_s11  ;;  %v104_v3 = vld [vmem:[%s207_s0 + $0xc] sm:$0x1]   ;;  %s133_s16 = smov 112   ;;  %s134_s17 = smov 96   ;;  %v105_v4 = vld [vmem:[%s207_s0 + $0xb] sm:$0x1]  }
   0x3   :  { %v106_v5 = vld [vmem:[%s207_s0 + $0xa] sm:$0x1]   ;;  %v2_v6 = vld [vmem:[%s207_s0] sm:$0x1]   ;;  %s135_s24 = smov 88   ;;  %s136_s25 = smov 80  }
   0x4   :  { %4 = vst.msk [vmem:[#allocation0] sm:$0x1] %vm3_vm0, %v2_v6   ;;  %v107_v7 = vld [vmem:[%s207_s0 + $0x9] sm:$0x1]   ;;  %v108_v8 = vld [vmem:[%s207_s0 + $0x8] sm:$0x1]  }
   0x5   :  { %s137_s30 = smov 72   ;;  %s138_s2 = smov 64   ;;  %v109_v9 = vld [vmem:[%s207_s0 + $0x7] sm:$0x1]   ;;  %v110_v10 = vld [vmem:[%s207_s0 + $0x6] sm:$0x1]  }
   0x6   :  { %13 = vrot.lane.b32.xlu0 %v102_v2, %s133_s16  ;;  %25 = vrot.lane.b32.xlu1 %v104_v3, %s134_s17  ;;  %s139_s7 = smov 56   ;;  %s140_s8 = smov 48   ;;  %v111_v11 = vld [vmem:[%s207_s0 + $0x5] sm:$0x1]   ;;  %v112_v12 = vld [vmem:[%s207_s0 + $0x4] sm:$0x1]  }
   0x7   :  { %s141_s13 = smov 40   ;;  %s142_s14 = smov 32   ;;  %v113_v13 = vld [vmem:[%s207_s0 + $0x3] sm:$0x1]   ;;  %v114_v14 = vld [vmem:[%s207_s0 + $0x2] sm:$0x1]  }
   0x8   :  { %s143_s19 = smov 24   ;;  %s144_s20 = smov 16   ;;  %v115_v15 = vld [vmem:[%s207_s0 + $0x1] sm:$0x1]   ;;  %vm27_vm4 = vcmask 851712   ;;  %vm33_vm5 = vcmask 786112  }
   0x9   :  { %s145_s0 = smov 8   ;;  %vm39_vm6 = vcmask 720512   ;;  %vm45_vm7 = vcmask 654912   ;;  %vm51_vm8 = vcmask 589312   ;;  %vm57_vm9 = vcmask 523712  }
   0xa   :  { %31 = vrot.lane.b32.xlu0 %v105_v4, %s135_s24  ;;  %37 = vrot.lane.b32.xlu1 %v106_v5, %s136_s25  ;;  %vm63_vm10 = vcmask 458112   ;;  %vm69_vm11 = vcmask 392512   ;;  %vm75_vm12 = vcmask 326912   ;;  %vm81_vm13 = vcmask 261312  }
   0xb   :  { %vm87_vm14 = vcmask 195712   ;;  %vm93_vm15 = vcmask 130112  }
   0xe   :  { %43 = vrot.lane.b32.xlu0 %v107_v7, %s137_s30  ;;  %49 = vrot.lane.b32.xlu1 %v108_v8, %s138_s2 }
  0x12   :  { %55 = vrot.lane.b32.xlu0 %v109_v9, %s139_s7  ;;  %61 = vrot.lane.b32.xlu1 %v110_v10, %s140_s8 }
  0x16   :  { %67 = vrot.lane.b32.xlu0 %v111_v11, %s141_s13  ;;  %73 = vrot.lane.b32.xlu1 %v112_v12, %s142_s14 }
  0x1a   :  { %79 = vrot.lane.b32.xlu0 %v113_v13, %s143_s19  ;;  %85 = vrot.lane.b32.xlu1 %v114_v14, %s144_s20 }
  0x1e   :  { %91 = vrot.lane.b32.xlu0 %v115_v15, %s145_s0 }
  0x74   :  { %v8_v16 = vpop.permute.xlu0 %7   ;;  %v20_v17 = vpop.permute.xlu1 %19  }
  0x75   :  { %10 = vst.msk [vmem:[#allocation0] sm:$0x1] %vm9_vm1, %v8_v16  }
  0x78   :  { %v14_v18 = vpop.permute.xlu0 %13   ;;  %v26_v19 = vpop.permute.xlu1 %25  }
  0x79   :  { %16 = vst.msk [vmem:[#allocation0] sm:$0x1] %vm15_vm2, %v14_v18  }
  0x7a   :  { %22 = vst.msk [vmem:[#allocation0] sm:$0x1] %vm21_vm3, %v20_v17  }
  0x7b   :  { %28 = vst.msk [vmem:[#allocation0] sm:$0x1] %vm27_vm4, %v26_v19  }
  0x7c   :  { %v32_v20 = vpop.permute.xlu0 %31   ;;  %v38_v21 = vpop.permute.xlu1 %37  }
  0x7d   :  { %34 = vst.msk [vmem:[#allocation0] sm:$0x1] %vm33_vm5, %v32_v20  }
  0x7e   :  { %40 = vst.msk [vmem:[#allocation0] sm:$0x1] %vm39_vm6, %v38_v21  }
  0x80   :  { %v44_v22 = vpop.permute.xlu0 %43   ;;  %v50_v23 = vpop.permute.xlu1 %49  }
  0x81   :  { %46 = vst.msk [vmem:[#allocation0] sm:$0x1] %vm45_vm7, %v44_v22  }
  0x82   :  { %52 = vst.msk [vmem:[#allocation0] sm:$0x1] %vm51_vm8, %v50_v23  }
  0x84   :  { %v56_v24 = vpop.permute.xlu0 %55   ;;  %v62_v25 = vpop.permute.xlu1 %61  }
  0x85   :  { %58 = vst.msk [vmem:[#allocation0] sm:$0x1] %vm57_vm9, %v56_v24  }
  0x86   :  { %64 = vst.msk [vmem:[#allocation0] sm:$0x1] %vm63_vm10, %v62_v25  }
  0x88   :  { %v68_v26 = vpop.permute.xlu0 %67   ;;  %v74_v27 = vpop.permute.xlu1 %73  }
  0x89   :  { %70 = vst.msk [vmem:[#allocation0] sm:$0x1] %vm69_vm11, %v68_v26  }
  0x8a   :  { %76 = vst.msk [vmem:[#allocation0] sm:$0x1] %vm75_vm12, %v74_v27  }
  0x8c   :  { %v80_v28 = vpop.permute.xlu0 %79   ;;  %v86_v29 = vpop.permute.xlu1 %85  }
  0x8d   :  { %82 = vst.msk [vmem:[#allocation0] sm:$0x1] %vm81_vm13, %v80_v28  }
  0x8e   :  { %88 = vst.msk [vmem:[#allocation0] sm:$0x1] %vm87_vm14, %v86_v29  }
  0x90   :  { %v92_v30 = vpop.permute.xlu0 %91  }
  0x91   :  { %94 = vst.msk [vmem:[#allocation0] sm:$0x1] %vm93_vm15, %v92_v30  }
  0x98   :  { %v98_v31 = vld [vmem:[#allocation0] sm:$0x1] }
  0x99   :  { %100 = vst [vmem:[%s208_s1] sm:$0x1] %v98_v31 }

// kernel: basic_block_forward.1
= control target key start
LH: loop header
LB: loop body
LE: loop exit
PB: predicated region body
PF: predicated region fallthrough
CT: control target
= control target key end

     0   :  { %vm184_vm0 = vcmask 523264   ;;  %v842_v45 = vmov 0   ;;  %s1084_s1 = inlined_call_operand.vmem [shape: bf16[192,256], index: 1, kind: input, shape index: {}]   ;;  %s1085_s0 = inlined_call_operand.vmem [shape: bf16[32,192], index: 0, kind: input, shape index: {}]   ;;  %s1086_s2 = inlined_call_operand.vmem [shape: bf16[128,384], index: 2, kind: input, shape index: {}]   ;;  %s1087_s3 = inlined_call_operand.vmem [shape: f32[8,128], index: 3, kind: input, shape index: {}]   ;;  %s1088_s4 = inlined_call_operand.vmem [shape: f32[32,128], index: 4, kind: output, shape index: {}]  }
   0x1   :  { %v768_v0 = vld [vmem:[%s1084_s1 + $0x4] ss:$8 sps:$4 sm:$0xff]   ;;  %v770_v1 = vld [vmem:[%s1084_s1] ss:$8 sps:$4 sm:$0xff]   ;;  %v771_v2 = vld [vmem:[%s1084_s1 + $0x14] ss:$8 sps:$4 sm:$0xff]   ;;  %480 = vmatprep.mubr.bf16.mxu1 %v842_v45 }
   0x2   :  { %191 = vmatprep.subr.bf16.mxu0 %v768_v0  ;;  %v773_v3 = vld [vmem:[%s1084_s1 + $0x10] ss:$8 sps:$4 sm:$0xff]   ;;  %v774_v4 = vld [vmem:[%s1084_s1 + $0x24] ss:$8 sps:$4 sm:$0xff]   ;;  %v776_v5 = vld [vmem:[%s1084_s1 + $0x20] ss:$8 sps:$4 sm:$0xff]  }
   0x3   :  { %192 = vmatpush1.bf16.msra.mxu0 %v770_v1  ;;  %v777_v6 = vld [vmem:[%s1084_s1 + $0x34] ss:$8 sps:$4 sm:$0xff]   ;;  %v779_v7 = vld [vmem:[%s1084_s1 + $0x30] ss:$8 sps:$4 sm:$0xff]   ;;  %v780_v8 = vld [vmem:[%s1084_s1 + $0x44] ss:$8 sps:$4 sm:$0xff]  }
   0x4   :  { %193 = vmatprep.subr.bf16.mxu0 %v771_v2  ;;  %v782_v9 = vld [vmem:[%s1084_s1 + $0x40] ss:$8 sps:$4 sm:$0xff]   ;;  %v783_v10 = vld [vmem:[%s1084_s1 + $0x54] ss:$8 sps:$4 sm:$0xff]   ;;  %v806_v11 = vld [vmem:[%s1085_s0 + $0x4] ss:$8 sps:$4 sm:$0xff]  }
   0x5   :  { %v785_v12 = vld [vmem:[%s1084_s1 + $0x50] ss:$8 sps:$4 sm:$0xff]   ;;  %v786_v13 = vld [vmem:[%s1084_s1 + $0x64] ss:$8 sps:$4 sm:$0xff]   ;;  %705 = vmatprep.mubr.msk.bf16.mxu0 %vm184_vm0, %v806_v11  ;;  %v813_v16 = vld [vmem:[%s1086_s2 + $0x1c] ss:$12 sps:$4 sm:$0xff]  }
   0x6   :  { %v810_v14 = vld [vmem:[%s1086_s2 + $0x4] ss:$12 sps:$4 sm:$0xff]   ;;  %v812_v15 = vld [vmem:[%s1086_s2] ss:$12 sps:$4 sm:$0xff]   ;;  %v789_v20 = vld [vmem:[%s1084_s1 + $0x74] ss:$8 sps:$4 sm:$0xff]  }
   0x7   :  { %194 = vmatpush1.bf16.msra.mxu0 %v773_v3  ;;  %448 = vmatprep.subr.bf16.mxu1 %v810_v14  ;;  %v815_v17 = vld [vmem:[%s1086_s2 + $0x18] ss:$12 sps:$4 sm:$0xff]   ;;  %v788_v18 = vld [vmem:[%s1084_s1 + $0x60] ss:$8 sps:$4 sm:$0xff]   ;;  %v818_v23 = vld [vmem:[%s1086_s2 + $0x30] ss:$12 sps:$4 sm:$0xff]  }
   0x8   :  { %195 = vmatprep.subr.bf16.mxu0 %v774_v4  ;;  %449 = vmatpush1.bf16.msra.mxu1 %v812_v15  ;;  %v816_v19 = vld [vmem:[%s1086_s2 + $0x34] ss:$12 sps:$4 sm:$0xff]   ;;  %v791_v21 = vld [vmem:[%s1084_s1 + $0x70] ss:$8 sps:$4 sm:$0xff]   ;;  %v792_v22 = vld [vmem:[%s1084_s1 + $0x84] ss:$8 sps:$4 sm:$0xff]  }
   0x9   :  { %450 = vmatprep.subr.bf16.mxu1 %v813_v16  ;;  %v819_v24 = vld [vmem:[%s1086_s2 + $0x4c] ss:$12 sps:$4 sm:$0xff]   ;;  %v821_v25 = vld [vmem:[%s1086_s2 + $0x48] ss:$12 sps:$4 sm:$0xff]   ;;  %v822_v27 = vld [vmem:[%s1086_s2 + $0x64] ss:$12 sps:$4 sm:$0xff]  }
   0xa   :  { %v794_v26 = vld [vmem:[%s1084_s1 + $0x80] ss:$8 sps:$4 sm:$0xff]   ;;  %v795_v28 = vld [vmem:[%s1084_s1 + $0x94] ss:$8 sps:$4 sm:$0xff]   ;;  %v797_v30 = vld [vmem:[%s1084_s1 + $0x90] ss:$8 sps:$4 sm:$0xff]  }
   0xb   :  { %196 = vmatpush1.bf16.msra.mxu0 %v776_v5  ;;  %v824_v29 = vld [vmem:[%s1086_s2 + $0x60] ss:$12 sps:$4 sm:$0xff]   ;;  %v825_v31 = vld [vmem:[%s1086_s2 + $0x7c] ss:$12 sps:$4 sm:$0xff]   ;;  %v827_v33 = vld [vmem:[%s1086_s2 + $0x78] ss:$12 sps:$4 sm:$0xff]  }
   0xc   :  { %197 = vmatprep.subr.bf16.mxu0 %v777_v6  ;;  %451 = vmatpush1.bf16.msra.mxu1 %v815_v17  ;;  %v798_v32 = vld [vmem:[%s1084_s1 + $0xa4] ss:$8 sps:$4 sm:$0xff]   ;;  %v800_v34 = vld [vmem:[%s1084_s1 + $0xa0] ss:$8 sps:$4 sm:$0xff]   ;;  %v801_v35 = vld [vmem:[%s1084_s1 + $0xb4] ss:$8 sps:$4 sm:$0xff]  }
   0xd   :  { %452 = vmatprep.subr.bf16.mxu1 %v816_v19  ;;  %v803_v36 = vld [vmem:[%s1084_s1 + $0xb0] ss:$8 sps:$4 sm:$0xff]   ;;  %v804_v37 = vld [vmem:[%s1085_s0] ss:$8 sps:$4 sm:$0xff]   ;;  %v807_v38 = vld [vmem:[%s1085_s0 + $0x14] ss:$8 sps:$4 sm:$0xff]  }
   0xe   :  { %v809_v39 = vld [vmem:[%s1085_s0 + $0x10] ss:$8 sps:$4 sm:$0xff]   ;;  %v828_v40 = vld [vmem:[%s1086_s2 + $0x94] ss:$12 sps:$4 sm:$0xff]  }
   0xf   :  { %198 = vmatpush1.bf16.msra.mxu0 %v779_v7  ;;  %v830_v41 = vld [vmem:[%s1086_s2 + $0x90] ss:$12 sps:$4 sm:$0xff]   ;;  %v831_v42 = vld [vmem:[%s1086_s2 + $0xac] ss:$12 sps:$4 sm:$0xff]   ;;  %v833_v43 = vld [vmem:[%s1086_s2 + $0xa8] ss:$12 sps:$4 sm:$0xff]  }
  0x10   :  { %199 = vmatprep.subr.bf16.mxu0 %v780_v8  ;;  %453 = vmatpush1.bf16.msra.mxu1 %v818_v23  ;;  %v834_v44 = vld [vmem:[%s1086_s2 + $0x8] ss:$12 sps:$4 sm:$0xff]   ;;  %v707_v46 = vld [vmem:[%s1087_s3] ss:$0 sm:$0xff]  ;;  %v708_v48 = vld [vmem:[%s1087_s3 + $0x1] ss:$0 sm:$0xff] }
  0x11   :  { %454 = vmatprep.subr.bf16.mxu1 %v819_v24  ;;  %v835_v62 = vld [vmem:[%s1086_s2 + $0x20] ss:$12 sps:$4 sm:$0xff]   ;;  %v836_v5 = vld [vmem:[%s1086_s2 + $0x38] ss:$12 sps:$4 sm:$0xff]   ;;  %v837_v8 = vld [vmem:[%s1086_s2 + $0x50] ss:$12 sps:$4 sm:$0xff]  }
  0x12   :  { %v840_v11 = vld [vmem:[%s1086_s2 + $0x98] ss:$12 sps:$4 sm:$0xff]  }
  0x13   :  { %200 = vmatpush1.bf16.msra.mxu0 %v782_v9  ;;  %v838_v9 = vld [vmem:[%s1086_s2 + $0x68] ss:$12 sps:$4 sm:$0xff]  }
  0x14   :  { %201 = vmatprep.subr.bf16.mxu0 %v783_v10  ;;  %455 = vmatpush1.bf16.msra.mxu1 %v821_v25  ;;  %v839_v10 = vld [vmem:[%s1086_s2 + $0x80] ss:$12 sps:$4 sm:$0xff]  }
  0x15   :  { %456 = vmatprep.subr.bf16.mxu1 %v822_v27 }
  0x17   :  { %202 = vmatpush1.bf16.msra.mxu0 %v785_v12  ;;  %v841_v12 = vld [vmem:[%s1086_s2 + $0xb0] ss:$12 sps:$4 sm:$0xff]  }
  0x18   :  { %203 = vmatprep.subr.bf16.mxu0 %v786_v13  ;;  %457 = vmatpush1.bf16.msra.mxu1 %v824_v29  ;;  %v550_v13 = vlaneseq }
  0x19   :  { %458 = vmatprep.subr.bf16.mxu1 %v825_v31 }
  0x1a   :  { %v551_v14 = vshrl.u32 %v550_v13, 7 }
  0x1b   :  { %204 = vmatpush1.bf16.msra.mxu0 %v788_v18 }
  0x1c   :  { %205 = vmatprep.subr.bf16.mxu0 %v789_v20  ;;  %459 = vmatpush1.bf16.msra.mxu1 %v827_v33  ;;  %v553_v17 = vadd.s32 16, %v551_v14  ;;  %vm611_vm1 = vcmp.lt.s32.totalorder %v551_v14, 1  ;;  %v559_v25 = vand.u32 15, %v551_v14  ;;  %vm628_vm4 = vcmp.lt.s32.totalorder %v551_v14, 7 }
  0x1d   :  { %460 = vmatprep.subr.bf16.mxu1 %v828_v40  ;;  %v554_v40 = vadd.s32 24, %v551_v14 }
  0x1e   :  { %v573_v23 = vand.u32 15, %v553_v17  ;;  %vm603_vm3 = vcmp.eq.s32.totalorder %v559_v25, 0 }
  0x1f   :  { %206 = vmatpush1.bf16.msra.mxu0 %v791_v21 }
  0x20   :  { %207 = vmatprep.subr.bf16.mxu0 %v792_v22  ;;  %461 = vmatpush1.bf16.msra.mxu1 %v830_v41  ;;  %vm605_vm2 = vcmp.eq.s32.totalorder %v573_v23, 0  ;;  %v552_v41 = vadd.s32 8, %v551_v14 }
  0x21   :  { %462 = vmatprep.subr.bf16.mxu1 %v831_v42  ;;  %v580_v42 = vand.u32 15, %v554_v40 }
  0x23   :  { %208 = vmatpush1.bf16.msra.mxu0 %v794_v26  ;;  %vm1047_vm5 = vcmp.eq.s32.totalorder %v580_v42, 15 }
  0x24   :  { %209 = vmatprep.subr.bf16.mxu0 %v795_v28  ;;  %463 = vmatpush1.bf16.msra.mxu1 %v833_v43 }
  0x25   :  { %747 = vmatprep.subr.bf16.mxu1 %v834_v44 }
  0x27   :  { %210 = vmatpush1.bf16.msra.mxu0 %v797_v30 }
  0x28   :  { %211 = vmatprep.subr.bf16.mxu0 %v798_v32 }
  0x2b   :  { %212 = vmatpush1.bf16.msra.mxu0 %v800_v34 }
  0x2c   :  { %213 = vmatprep.subr.bf16.mxu0 %v801_v35 }
  0x2f   :  { %214 = vmatpush1.bf16.msra.mxu0 %v803_v36 }
  0x32   :  { %224 = vmatmul.mubr.bf16.vlgmr.msra.gmra.mrb[0].mxu0 %v804_v37 }
  0x33   :  { %706 = vmatprep.mubr.msk.bf16.mxu0 %vm184_vm0, %v807_v38 }
  0x3a   :  { %234 = vmatmul.mubr.bf16.gmra.mrb[4].mxu0 %v809_v39 }
 0x105   :  { %v225_v47 = vpop.f32.mrb[0].mxu0 }
 0x106   :  { %v254_v49 = vmul.f32 %v707_v46, %v225_v47  ;;  %v1011_v50 = vpop.f32.mrb[1].mxu0 }
 0x107   :  { %v229_v51 = vpop.f32.mrb[2].mxu0 }
 0x108   :  { %v262_v52 = vadd.f32 %v708_v48, %v254_v49  ;;  %v255_v53 = vmul.f32 %v707_v46, %v229_v51  ;;  %v1013_v54 = vpop.f32.mrb[3].mxu0 }
 0x10a   :  { %v263_v55 = vadd.f32 %v708_v48, %v255_v53  ;;  %v266_v56 = vmax.f32 %v262_v52, 0.0 }
 0x10c   :  { %v267_v57 = vmax.f32 %v263_v55, 0.0 }
 0x10d   :  { %v235_v58 = vpop.f32.mrb[4].mxu0 }
 0x10e   :  { %v256_v59 = vmul.f32 %v707_v46, %v235_v58  ;;  %v1015_v60 = vpop.f32.mrb[5].mxu0  ;;  %v286_v61 = vpack.c.bf16 %v267_v57, %v266_v56 }
 0x10f   :  { %v239_v63 = vpop.f32.mrb[6].mxu0 }
 0x110   :  { %v264_v0 = vadd.f32 %v708_v48, %v256_v59  ;;  %v257_v1 = vmul.f32 %v707_v46, %v239_v63  ;;  %481 = vmatmul.mubr.bf16.vlgmr.msra.gmra.mrb[0].mxu1 %v286_v61  ;;  %v1020_v2 = vpop.f32.mrb[7].mxu0  ;;  %v709_v46 = vld [vmem:[%s1087_s3 + $0x4] ss:$0 sm:$0xff]  ;;  %v735_v59 = vld [vmem:[%s1087_s3 + $0x2] ss:$0 sm:$0xff] }
 0x111   :  { %748 = vmatpush3.bf16.msra.mxu1 %v834_v44  ;;  %490 = vmatprep.mubr.bf16.mxu1 %v842_v45  ;;  %v566_v44 = vand.u32 15, %v552_v41  ;;  %v274_v57 = vmul.f32 %v709_v46, %v1011_v50  ;;  %v276_v58 = vmul.f32 %v709_v46, %v1015_v60  ;;  %v736_v50 = vld [vmem:[%s1087_s3 + $0x3] ss:$0 sm:$0xff] }
 0x112   :  { %v268_v3 = vmax.f32 %v264_v0, 0.0  ;;  %v265_v4 = vadd.f32 %v708_v48, %v257_v1  ;;  %749 = vmatprep.subr.bf16.mxu1 %v835_v62 }
 0x113   :  { %vm1051_vm6 = vcmp.eq.s32.totalorder %v566_v44, 15 }
 0x114   :  { %v269_v6 = vmax.f32 %v265_v4, 0.0  ;;  %v277_v4 = vmul.f32 %v709_v46, %v1020_v2 }
 0x115   :  { %750 = vmatpush3.bf16.msra.mxu1 %v835_v62 }
 0x116   :  { %751 = vmatprep.subr.bf16.mxu1 %v836_v5  ;;  %v287_v7 = vpack.c.bf16 %v269_v6, %v268_v3 }
 0x118   :  { %491 = vmatmul.mubr.bf16.gmra.mrb[4].mxu1 %v287_v7 }
 0x119   :  { %752 = vmatpush3.bf16.msra.mxu1 %v836_v5  ;;  %763 = vmatprep.mubr.bf16.mxu1 %v286_v61 }
 0x11a   :  { %753 = vmatprep.subr.bf16.mxu1 %v837_v8 }
 0x11d   :  { %754 = vmatpush3.bf16.msra.mxu1 %v837_v8  ;;  %v275_v8 = vmul.f32 %v709_v46, %v1013_v54 }
 0x11e   :  { %755 = vmatprep.subr.bf16.mxu1 %v838_v9 }
 0x121   :  { %756 = vmatpush3.bf16.msra.mxu1 %v838_v9 }
 0x122   :  { %757 = vmatprep.subr.bf16.mxu1 %v839_v10 }
 0x125   :  { %758 = vmatpush3.bf16.msra.mxu1 %v839_v10 }
 0x126   :  { %759 = vmatprep.subr.bf16.mxu1 %v840_v11 }
 0x129   :  { %760 = vmatpush3.bf16.msra.mxu1 %v840_v11 }
 0x12a   :  { %761 = vmatprep.subr.bf16.mxu1 %v841_v12 }
 0x12d   :  { %762 = vmatpush3.bf16.msra.mxu1 %v841_v12 }
 0x130   :  { %764 = vmatmul.mubr.bf16.vlgmr.msra.gmra.mrb[8].mxu1 %v287_v7  ;;  %v710_v7 = vld [vmem:[%s1087_s3 + $0x5] ss:$0 sm:$0xff] }
 0x131   :  { %v284_v2 = vadd.f32 %v710_v7, %v276_v58 }
 0x1e3   :  { %v482_v15 = vpop.f32.mrb[0].mxu1 }
 0x1e4   :  { %v484_v16 = vpop.f32.mrb[1].mxu1  ;;  %v607_v19 = vrot.slane %v482_v15, 7  ;;  %v282_v15 = vadd.f32 %v710_v7, %v274_v57 }
 0x1e5   :  { %v486_v18 = vpop.f32.mrb[2].mxu1 }
 0x1e6   :  { %v608_v20 = vrot.slane %v486_v18, 7  ;;  %v488_v21 = vpop.f32.mrb[3].mxu1 }
 0x1e8   :  { %v614_v22 = vsel %vm611_vm1, %v607_v19, %v608_v20 }
 0x1e9   :  { %v638_v24 = vadd.f32 %v614_v22, %v488_v21 }
 0x1eb   :  { %v492_v26 = vpop.f32.mrb[4].mxu1 }
 0x1ec   :  { %v609_v27 = vrot.slane %v492_v26, 7  ;;  %v494_v28 = vpop.f32.mrb[5].mxu1 }
 0x1ed   :  { %v496_v29 = vpop.f32.mrb[6].mxu1 }
 0x1ee   :  { %v613_v30 = vsel %vm611_vm1, %v608_v20, %v609_v27  ;;  %v610_v31 = vrot.slane %v496_v29, 7  ;;  %v498_v32 = vpop.f32.mrb[7].mxu1 }
 0x1ef   :  { %v618_v33 = vsel %vm605_vm2, 0.0, %v613_v30 }
 0x1f0   :  { %v639_v34 = vadd.f32 %v618_v33, %v494_v28  ;;  %v615_v35 = vsel %vm611_vm1, %v610_v31, %v607_v19  ;;  %v612_v36 = vsel %vm611_vm1, %v609_v27, %v610_v31  ;;  %v283_v19 = vadd.f32 %v710_v7, %v275_v8 }
 0x1f1   :  { %v616_v37 = vsel %vm603_vm3, 0.0, %v615_v35  ;;  %v640_v38 = vadd.f32 %v612_v36, %v498_v32 }
 0x1f2   :  { %v637_v39 = vadd.f32 %v616_v37, %v484_v16  ;;  %v285_v16 = vadd.f32 %v710_v7, %v277_v4 }
 0x203   :  { %v765_v43 = vpop.f32.mrb[8].mxu1 }
 0x204   :  { %v535_v45 = vpop.f32.mrb[9].mxu1  ;;  %v626_v49 = vrot.slane %v765_v43, 1 }
 0x205   :  { %v624_v47 = vrot.slane %v535_v45, 1  ;;  %v766_v48 = vpop.f32.mrb[10].mxu1 }
 0x206   :  { %v627_v52 = vrot.slane %v766_v48, 1  ;;  %v538_v53 = vpop.f32.mrb[11].mxu1 }
 0x207   :  { %v625_v56 = vrot.slane %v538_v53, 1 }
 0x208   :  { %v629_v61 = vsel %vm628_vm4, %v626_v49, %v627_v52  ;;  %v632_v62 = vsel %vm628_vm4, %v627_v52, %v624_v47 }
 0x209   :  { %v636_v63 = vsel %vm1047_vm5, 0.0, %v632_v62  ;;  %v643_v0 = vadd.f32 %v639_v34, %v629_v61  ;;  %v630_v1 = vsel %vm628_vm4, %v625_v56, %v626_v49  ;;  %v631_v3 = vsel %vm628_vm4, %v624_v47, %v625_v56 }
 0x20a   :  { %v644_v5 = vadd.f32 %v640_v38, %v636_v63  ;;  %v634_v60 = vsel %vm1051_vm6, 0.0, %v630_v1  ;;  %v641_v6 = vadd.f32 %v637_v39, %v631_v3 }
 0x20b   :  { %v651_v9 = vmul.f32 %v735_v59, %v643_v0  ;;  %v642_v10 = vadd.f32 %v638_v24, %v634_v60 }
 0x20c   :  { %v652_v11 = vmul.f32 %v735_v59, %v644_v5  ;;  %v649_v12 = vmul.f32 %v735_v59, %v641_v6 }
 0x20d   :  { %v659_v13 = vadd.f32 %v736_v50, %v651_v9  ;;  %v650_v14 = vmul.f32 %v735_v59, %v642_v10 }
 0x20e   :  { %v660_v17 = vadd.f32 %v736_v50, %v652_v11  ;;  %v657_v18 = vadd.f32 %v736_v50, %v649_v12 }
 0x20f   :  { %v663_v20 = vadd.f32 %v659_v13, %v284_v2  ;;  %v658_v21 = vadd.f32 %v736_v50, %v650_v14 }
 0x210   :  { %v664_v22 = vadd.f32 %v660_v17, %v285_v16  ;;  %v661_v23 = vadd.f32 %v657_v18, %v282_v15 }
 0x211   :  { %v667_v25 = vmax.f32 %v663_v20, 0.0  ;;  %v662_v26 = vadd.f32 %v658_v21, %v283_v19 }
 0x212   :  { %v668_v27 = vmax.f32 %v664_v22, 0.0  ;;  %v665_v54 = vmax.f32 %v661_v23, 0.0 }
 0x213   :  { %671 = vst [vmem:[%s1088_s4 + $0x10] sm:$0xff] %v667_v25  ;;  %v666_v24 = vmax.f32 %v662_v26, 0.0 }
 0x214   :  { %672 = vst [vmem:[%s1088_s4 + $0x18] sm:$0xff] %v668_v27  ;;  %669 = vst [vmem:[%s1088_s4] sm:$0xff] %v665_v54 }
 0x215   :  { %670 = vst [vmem:[%s1088_s4 + $0x8] sm:$0xff] %v666_v24 }

</bundles_post_ra>
